<compile_context>
chip_gen: v7x
topology: tpu7x:2x2x1
jax: 0.10.0
libtpu: 0.0.40
codegen_flags: <defaults>
</compile_context>

<pallas_src>
import jax
import jax.numpy as jnp
import numpy as np
from jax.experimental import pallas as pl
from jax.experimental.pallas import tpu as pltpu


def _round_up(n, m):
    return ((n + m - 1) // m) * m


# ---------------------------------------------------------------------------
# Kernel 1: fused Linear + threshold reduction (whole problem fits VMEM even at
# the real 128x512 @ 512x512 padded size, so no grid needed).
#   out_ref <- x @ W + b        (W stored pre-transposed & zero-padded [IN_pad, OUT_pad])
#   thr_ref <- sum(out) / batch (== out.sum(axis=1).mean(); padded cols are exactly 0)
# ---------------------------------------------------------------------------
def linear_thresh_kernel(x_ref, w_ref, b_ref, out_ref, thr_ref):
    x = x_ref[...]
    y = jnp.dot(x, w_ref[...], preferred_element_type=jnp.float32) + b_ref[...]
    out_ref[...] = y.astype(out_ref.dtype)
    thr_ref[0, 0] = jnp.sum(y) / jnp.float32(x_ref.shape[0])


def linear_with_threshold(x_pad, w_t_pad, b_pad):
    """x_pad: (B, IN_pad) f32, w_t_pad: (IN_pad, OUT_pad) f32, b_pad: (1, OUT_pad) f32
    -> (out_pad (B, OUT_pad) f32, thr (1,1) f32)."""
    B, _ = x_pad.shape
    OUT_pad = w_t_pad.shape[1]
    return pl.pallas_call(
        linear_thresh_kernel,
        out_shape=(
            jax.ShapeDtypeStruct((B, OUT_pad), jnp.float32),
            jax.ShapeDtypeStruct((1, 1), jnp.float32),
        ),
        in_specs=[
            pl.BlockSpec(memory_space=pltpu.VMEM),
            pl.BlockSpec(memory_space=pltpu.VMEM),
            pl.BlockSpec(memory_space=pltpu.VMEM),
        ],
        out_specs=(
            pl.BlockSpec(memory_space=pltpu.VMEM),
            pl.BlockSpec(memory_space=pltpu.SMEM),
        ),
    )(x_pad, w_t_pad, b_pad)


# ---------------------------------------------------------------------------
# Kernel 2: elementwise mask > threshold, streamed over row tiles of the
# flattened mask, with a fused per-tile hit count.
# ---------------------------------------------------------------------------
def _vmem_capacity_bytes():
    try:
        return int(pltpu.get_tpu_info().vmem_capacity_bytes)
    except Exception:
        return 64 << 20               # conservative fallback (v7x per-TC size)


def _mask_tile_params():
    """(target f32 input bytes per block, scoped vmem_limit_bytes), per generation."""
    if _vmem_capacity_bytes() >= (96 << 20):   # v5e / v6e: 128 MiB VMEM
        return 16 << 20, 64 << 20
    return 10 << 20, 32 << 20                  # v7x: 64 MiB per TensorCore


def _choose_tile_rows(n_rows, n_cols, target_bytes):
    """Row tile for the streaming compare: always byte-capped (never the full row
    count), a multiple of 8 sublanes, preferring an even divisor of n_rows so the
    count path needs no tail masking."""
    max_rows = max(8, (target_bytes // (n_cols * 4)) // 8 * 8)
    if n_rows <= max_rows:
        return n_rows                 # full extent is always a legal block dim
    for cand in range(max_rows, 7, -8):
        if n_rows % cand == 0:
            return cand
    return max_rows                   # ragged tail; kernel masks the overhang


def mask_greater_than(mask3d, thr, tile_rows=None):
    """mask3d: (D0,D1,D2) f32, thr: (1,1) f32
       -> (int8 flags (D0,D1,D2), int32 per-tile hit counts (n_tiles,))."""
    D0, D1, D2 = mask3d.shape
    R = D0 * D1
    mask2d = mask3d.reshape(R, D2)            # lane-dense last dim, metadata-only reshape
    target_bytes, vmem_limit = _mask_tile_params()
    if tile_rows is None:
        tile_rows = _choose_tile_rows(R, D2, target_bytes)
    n_tiles = pl.cdiv(R, tile_rows)
    ragged = (R % tile_rows) != 0

    def kernel(thr_ref, mask_ref, flags_ref, cnt_ref):
        t = thr_ref[0, 0]
        hit = mask_ref[...] > t
        flags_ref[...] = hit.astype(jnp.int8)
        if ragged:
            # Last block overhangs R: exclude padded rows from the count
            # (their flag stores are discarded by Pallas anyway).
            row = (pl.program_id(0) * tile_rows
                   + jax.lax.broadcasted_iota(jnp.int32, hit.shape, 0))
            hit = jnp.logical_and(hit, row < R)
        cnt = jnp.sum(hit.astype(jnp.int32))
        cnt_ref[...] = jnp.broadcast_to(cnt, cnt_ref.shape)

    flags2d, counts = pl.pallas_call(
        kernel,
        out_shape=(
            jax.ShapeDtypeStruct((R, D2), jnp.int8),
            jax.ShapeDtypeStruct((n_tiles, 8, 128), jnp.int32),
        ),
        grid=(n_tiles,),
        in_specs=[
            pl.BlockSpec(memory_space=pltpu.SMEM),             # thr: resident scalar
            pl.BlockSpec((tile_rows, D2), lambda i: (i, 0)),   # row tiles of mask
        ],
        out_specs=(
            pl.BlockSpec((tile_rows, D2), lambda i: (i, 0)),
            pl.BlockSpec((1, 8, 128), lambda i: (i, 0, 0)),
        ),
        compiler_params=pltpu.CompilerParams(
            dimension_semantics=("parallel",),   # lets v7x shard tiles across both TCs
            vmem_limit_bytes=vmem_limit,
        ),
    )(thr, mask2d)
    return flags2d.reshape(D0, D1, D2), counts[:, 0, 0]


# ---------------------------------------------------------------------------
# Module wrapper mirroring MyModule.forward
# ---------------------------------------------------------------------------
class MyModulePallas:
    def __init__(self, in_features, out_features, key, bias=True):
        self.in_features = in_features
        self.out_features = out_features
        # Pad once at init to MXU/lane-friendly shapes (multiples of 128).
        self.in_pad = _round_up(in_features, 128)
        self.out_pad = _round_up(out_features, 128)

        kw, kb = jax.random.split(key)
        bound = 1.0 / np.sqrt(in_features)
        # Analogous to nn.Linear's uniform(-1/sqrt(in), 1/sqrt(in)); stored
        # pre-transposed as [IN, OUT] so the kernel does x @ W directly.
        w_t = jax.random.uniform(
            kw, (in_features, out_features), jnp.float32, -bound, bound)
        if bias:
            b = jax.random.uniform(
                kb, (1, out_features), jnp.float32, -bound, bound)
        else:
            b = jnp.zeros((1, out_features), jnp.float32)

        self.w_t = (jnp.zeros((self.in_pad, self.out_pad), jnp.float32)
                    .at[:in_features, :out_features].set(w_t))
        self.b = (jnp.zeros((1, self.out_pad), jnp.float32)
                  .at[:, :out_features].set(b))
        self.last_threshold = None

    def forward(self, x, mask, *, debug=False, mask_tile_rows=None):
        B, IN = x.shape
        x_pad = x if IN == self.in_pad else jnp.pad(x, ((0, 0), (0, self.in_pad - IN)))

        out_pad, thr = linear_with_threshold(x_pad, self.w_t, self.b)
        out = out_pad[:, :self.out_features]
        self.last_threshold = thr              # stays on-device; no host sync here

        flags, tile_counts = mask_greater_than(mask, thr, tile_rows=mask_tile_rows)

        if debug:   # original module prints; guarded so it doesn't serialize the pipeline
            print("threshold : ", float(thr[0, 0]))

        # TODO(synk): nonzero has a data-dependent output shape; no static Pallas
        # equivalent, so the index gather stays in XLA. The fused per-tile counts give
        # the exact total, so nonzero skips its own full-array counting pass.
        total = int(jnp.sum(tile_counts))
        hi_idx = jnp.nonzero(flags, size=total)
        if debug:
            print("hi_idx : ", hi_idx)
        return out, hi_idx


if __name__ == "__main__":
    key = jax.random.PRNGKey(0)
    k_in, k_mask, k_param = jax.random.split(key, 3)

    # Small stand-ins for the real (128, 500) Linear input and 500^3 mask.
    B, IN, OUT = 8, 32, 16
    D0, D1, D2 = 16, 16, 128

    x = jax.random.uniform(k_in, (B, IN), jnp.float32)
    mask = jax.random.uniform(k_mask, (D0, D1, D2), jnp.float32)

    mod = MyModulePallas(IN, OUT, k_param, bias=True)

    # 1) evenly tiled mask grid (4 blocks of 64 rows)
    out, hi_idx = mod.forward(x, mask, mask_tile_rows=64)
    jax.block_until_ready(out)
    for idx in hi_idx:
        jax.block_until_ready(idx)

    # ---- reference in plain numpy (padded W/b cols are zero, so slicing is exact) ----
    ref_out = np.asarray(x) @ np.asarray(mod.w_t[:IN, :OUT]) + np.asarray(mod.b[:, :OUT])
    assert np.allclose(np.asarray(out), ref_out, rtol=1e-5, atol=1e-5)

    thr_val = float(np.asarray(mod.last_threshold)[0, 0])
    assert np.allclose(thr_val, ref_out.sum(axis=1).mean(), rtol=1e-5, atol=1e-5)

    ref_idx = np.nonzero(np.asarray(mask) > thr_val)
    assert len(hi_idx) == len(ref_idx)
    for a, b in zip(hi_idx, ref_idx):
        assert np.array_equal(np.asarray(a), b)

    # 2) ragged tiling (6 blocks of 48 rows; last block partial) exercises the
    #    tail-masked count path.
    out2, hi_idx2 = mod.forward(x, mask, mask_tile_rows=48)
    jax.block_until_ready(out2)
    for a, b in zip(hi_idx2, ref_idx):
        assert np.array_equal(np.asarray(a), b)

    # 3) non-128 last dim (like the real D2=500): lane-partial store path.
    mask_b = jax.random.uniform(jax.random.PRNGKey(1), (8, 12, 100), jnp.float32)
    out3, hi_idx3 = mod.forward(x, mask_b, mask_tile_rows=32)
    jax.block_until_ready(out3)
    ref_idx_b = np.nonzero(np.asarray(mask_b) > thr_val)
    for a, b in zip(hi_idx3, ref_idx_b):
        assert np.array_equal(np.asarray(a), b)

    print("KERNEL_OK")
</pallas_src>

<mosaic_0001>
module attributes {stable_mosaic.version = 11 : i64} {
  func.func @linear_thresh_kernel(%arg0: memref<8x128xf32, #tpu.memory_space<vmem>>, %arg1: memref<128x128xf32, #tpu.memory_space<vmem>>, %arg2: memref<1x128xf32, #tpu.memory_space<vmem>>, %arg3: memref<8x128xf32, #tpu.memory_space<vmem>>, %arg4: memref<1x1xf32, #tpu.memory_space<smem>>) attributes {dimension_semantics = [], scalar_prefetch = 0 : i64, scratch_operands = 0 : i64, tpu.core_type = #tpu.core_type<tc>} {
    %c0 = arith.constant 0 : index
    %c0_0 = arith.constant 0 : index
    %0 = vector.load %arg0[%c0, %c0_0] : memref<8x128xf32, #tpu.memory_space<vmem>>, vector<8x128xf32>
    %c0_1 = arith.constant 0 : index
    %c0_2 = arith.constant 0 : index
    %1 = vector.load %arg1[%c0_1, %c0_2] : memref<128x128xf32, #tpu.memory_space<vmem>>, vector<128x128xf32>
    %cst = arith.constant dense<0.000000e+00> : vector<8x128xf32>
    %2 = tpu.matmul %0, %1, %cst {dimension_numbers = #tpu.dot_dimension_numbers<[1], [0], [0], [1], [0, 0, 1, 1], [], []>} : vector<8x128xf32>, vector<128x128xf32>, vector<8x128xf32> -> vector<8x128xf32>
    %c0_3 = arith.constant 0 : index
    %c0_4 = arith.constant 0 : index
    %3 = vector.load %arg2[%c0_3, %c0_4] : memref<1x128xf32, #tpu.memory_space<vmem>>, vector<1x128xf32>
    %4 = vector.broadcast %3 : vector<1x128xf32> to vector<8x128xf32>
    %5 = arith.addf %2, %4 : vector<8x128xf32>
    %c0_5 = arith.constant 0 : index
    %c0_6 = arith.constant 0 : index
    %6 = vector.load %arg3[%c0_5, %c0_6] : memref<8x128xf32, #tpu.memory_space<vmem>>, vector<8x128xf32>
    tpu.vector_store %arg3[%c0_5, %c0_6], %5 {strides = array<i32>} : memref<8x128xf32, #tpu.memory_space<vmem>>, vector<8x128xf32>,
    %7 = vector.shape_cast %5 : vector<8x128xf32> to vector<1x8x128xf32>
    %cst_7 = arith.constant dense<0.000000e+00> : vector<1xf32>
    %8 = vector.multi_reduction <add>, %7, %cst_7 [1, 2] : vector<1x8x128xf32> to vector<1xf32>
    %9 = vector.shape_cast %8 : vector<1xf32> to vector<1x1x1xf32>
    %10 = vector.extract %9[0, 0, 0] : f32 from vector<1x1x1xf32>
    %cst_8 = arith.constant 8.000000e+00 : f32
    %11 = arith.divf %10, %cst_8 : f32
    %c0_9 = arith.constant 0 : index
    %c0_10 = arith.constant 0 : index
    %12 = memref.load %arg4[%c0_9, %c0_10] : memref<1x1xf32, #tpu.memory_space<smem>>
    memref.store %11, %arg4[%c0_9, %c0_10] : memref<1x1xf32, #tpu.memory_space<smem>>
    return
  }
}

</mosaic_0001>

<bundles_post_ra>
// kernel: tpu_custom_call.1
= control target key start
LH: loop header
LB: loop body
LE: loop exit
PB: predicated region body
PF: predicated region fallthrough
CT: control target
= control target key end

     0   :  { %10 = vsyncpa [#allocation3], 0  ;;  %s446_s0 = inlined_call_operand.hbm [shape: f32[8,128], index: 0, kind: input, shape index: {}]   ;;  %s447_s1 = inlined_call_operand.hbm [shape: f32[128,128], index: 1, kind: input, shape index: {}]   ;;  %s448_s2 = inlined_call_operand.vmem [shape: f32[1,128], index: 2, kind: input, shape index: {}]   ;;  %s449_s3 = inlined_call_operand.hbm [shape: f32[8,128], index: 3, kind: output, shape index: {0}]   ;;  %s450_s4 = inlined_call_operand.hbm [shape: f32[1,1], index: 4, kind: output, shape index: {1}]  }
   0x1   :  { %11 = vsyncpa [#allocation7], 0 }
   0x2   :  { %12 = vsyncpa [#allocation4], 0 }
   0x3   :  { %13 = vsyncpa [#allocation5], 0  ;;  %s354_s15 = smov [#allocation2]   ;;  %s355_s17 = smov [#allocation6]  }
   0x4   :  { %s20_s16 = sshll.u32 %s354_s15, 4  ;;  %s29_s18 = sshll.u32 %s355_s17, 4  ;;  %s21_s16 = int_to_ptr.vmem [resolvable:$true] %s20_s16  ;;  %s388_s18 = int_to_ptr.vmem [resolvable:$true] %s29_s18 }
   0x5   :  { %s270_s21 = scalar_lea.hbm %s446_s0, 128 }
   0x6   :  { %p271_p0 = scmp.ne.s32.totalorder %s446_s0, %s270_s21  ;;  %p274_p1 = scmp.lt.u32.totalorder %s270_s21, %s446_s0 }
   0x8   :  { %p276_p2 = pnand %p274_p1, %p271_p0 }
   0xa   :  { %279 = shalt.err (!%p276_p2)
}
   0xb   :  { %s280_s26 = scalar_lea.vmem %s21_s16, 128  ;;  %p285_p4 = scmp.lt.s32.totalorder %s21_s16, %s21_s16 }
   0xc   :  { %p281_p3 = scmp.ne.s32.totalorder %s21_s16, %s280_s26  ;;  %p286_p5 = scmp.lt.s32.totalorder %s280_s26, %s280_s26 }
   0xe   :  { %p287_p6 = por %p286_p5, %p285_p4 }
  0x10   :  { %p288_p7 = pnand %p287_p6, %p281_p3 }
  0x12   :  { %291 = shalt.err (!%p288_p7)
}
  0x13   :  { %23 = dma.hbm_to_vmem [thread:$0]  %s446_s0, 128, %s21_s16, [#allocation3]  }
  0x14   :  { %s292_s5 = scalar_lea.hbm %s447_s1, 2048 }
  0x15   :  { %p293_p8 = scmp.ne.s32.totalorder %s447_s1, %s292_s5  ;;  %p296_p9 = scmp.lt.u32.totalorder %s292_s5, %s447_s1 }
  0x17   :  { %p298_p10 = pnand %p296_p9, %p293_p8 }
  0x19   :  { %301 = shalt.err (!%p298_p10)
}
  0x1a   :  { %s302_s10 = scalar_lea.vmem %s388_s18, 2048  ;;  %p307_p12 = scmp.lt.s32.totalorder %s388_s18, %s388_s18 }
  0x1b   :  { %p303_p11 = scmp.ne.s32.totalorder %s388_s18, %s302_s10  ;;  %p308_p13 = scmp.lt.s32.totalorder %s302_s10, %s302_s10 }
  0x1d   :  { %p309_p0 = por %p308_p13, %p307_p12 }
  0x1f   :  { %p310_p1 = pnand %p309_p0, %p303_p11 }
  0x21   :  { %313 = shalt.err (!%p310_p1)
}
  0x22   :  { %s356_s0 = smov 128   ;;  %s357_s11 = smov 8  }
  0x23   :  { %35 = dma.hbm_to_vmem [thread:$0]  %s447_s1, 2048, %s388_s18, [#allocation7], %s356_s0, %s356_s0, %s357_s11  }
  0x24   :  { %346 = dma.done.wait [#allocation3], 128  }
  0x25   :  { %347 = vsyncadd [#allocation3], 4294967168 }
  0x26   :  { %348 = dma.done.wait [#allocation7], 2048  }
  0x27   :  { %349 = vsyncadd [#allocation7], 4294965248  ;;  %v358_v0 = vmov 0.0|0.0   ;;  %vm359_vm0 = vmmov 0   ;;  %v360_v1 = vmov 0.0   ;;  %v45_v2 = vld [vmem:[#allocation6] sm:$0xff] }
  0x28   :  { %235 = vmatprep.subr.bf16.mxu0 %v358_v0  ;;  %232 = vmatprep.mubr.msk.f32.mxu0 %vm359_vm0, %v360_v1  ;;  %v46_v3 = vld [vmem:[#allocation6 + $0x8] sm:$0xff]  ;;  %v47_v4 = vld [vmem:[#allocation6 + $0x10] sm:$0xff]  ;;  %v48_v6 = vld [vmem:[#allocation6 + $0x18] sm:$0xff]  ;;  %s361_s15 = smov [#allocation8]  }
  0x29   :  { %v236_v5 = vpack.c.bf16 %v46_v3, %v45_v2  ;;  %v239_v7 = vpack.c.bf16 %v48_v6, %v47_v4  ;;  %v49_v8 = vld [vmem:[#allocation6 + $0x20] sm:$0xff]  ;;  %v50_v9 = vld [vmem:[#allocation6 + $0x28] sm:$0xff]  ;;  %v51_v11 = vld [vmem:[#allocation6 + $0x30] sm:$0xff]  ;;  %s159_s16 = sshll.u32 %s361_s15, 4  ;;  %s160_s16 = int_to_ptr.vmem [resolvable:$true] %s159_s16 }
  0x2a   :  { %v242_v10 = vpack.c.bf16 %v50_v9, %v49_v8  ;;  %v52_v12 = vld [vmem:[#allocation6 + $0x38] sm:$0xff]  ;;  %v53_v14 = vld [vmem:[#allocation6 + $0x40] sm:$0xff]  ;;  %v54_v15 = vld [vmem:[#allocation6 + $0x48] sm:$0xff]  ;;  %s314_s17 = scalar_lea.vmem %s160_s16, 128  ;;  %p319_p3 = scmp.lt.s32.totalorder %s160_s16, %s160_s16 }
  0x2b   :  { %237 = vmatpush3.bf16.msra.mxu0 %v236_v5  ;;  %v245_v13 = vpack.c.bf16 %v52_v12, %v51_v11  ;;  %v248_v16 = vpack.c.bf16 %v54_v15, %v53_v14  ;;  %v55_v17 = vld [vmem:[#allocation6 + $0x50] sm:$0xff]  ;;  %v56_v18 = vld [vmem:[#allocation6 + $0x58] sm:$0xff]  ;;  %v57_v20 = vld [vmem:[#allocation6 + $0x60] sm:$0xff]  ;;  %p315_p2 = scmp.ne.s32.totalorder %s160_s16, %s314_s17  ;;  %p320_p4 = scmp.lt.s32.totalorder %s314_s17, %s314_s17 }
  0x2c   :  { %238 = vmatprep.subr.bf16.mxu0 %v358_v0  ;;  %v251_v19 = vpack.c.bf16 %v56_v18, %v55_v17  ;;  %v58_v21 = vld [vmem:[#allocation6 + $0x68] sm:$0xff]  ;;  %v59_v23 = vld [vmem:[#allocation6 + $0x70] sm:$0xff]  ;;  %v60_v24 = vld [vmem:[#allocation6 + $0x78] sm:$0xff] }
  0x2d   :  { %v254_v22 = vpack.c.bf16 %v58_v21, %v57_v20  ;;  %v257_v25 = vpack.c.bf16 %v60_v24, %v59_v23  ;;  %v44_v26 = vld [vmem:[#allocation2] sm:$0xff]  ;;  %p321_p5 = por %p320_p4, %p319_p3 }
  0x2e   :  { %v182_v27 = vld [vmem:[%s448_s2] ss:$0 sm:$0xff] }
  0x2f   :  { %240 = vmatpush3.bf16.msra.mxu0 %v239_v7  ;;  %p322_p6 = pnand %p321_p5, %p315_p2 }
  0x30   :  { %241 = vmatprep.subr.bf16.mxu0 %v358_v0 }
  0x33   :  { %243 = vmatpush3.bf16.msra.mxu0 %v242_v10 }
  0x34   :  { %244 = vmatprep.subr.bf16.mxu0 %v358_v0 }
  0x37   :  { %246 = vmatpush3.bf16.msra.mxu0 %v245_v13 }
  0x38   :  { %247 = vmatprep.subr.bf16.mxu0 %v358_v0 }
  0x3b   :  { %249 = vmatpush3.bf16.msra.mxu0 %v248_v16 }
  0x3c   :  { %250 = vmatprep.subr.bf16.mxu0 %v358_v0 }
  0x3f   :  { %252 = vmatpush3.bf16.msra.mxu0 %v251_v19 }
  0x40   :  { %253 = vmatprep.subr.bf16.mxu0 %v358_v0 }
  0x43   :  { %255 = vmatpush3.bf16.msra.mxu0 %v254_v22 }
  0x44   :  { %256 = vmatprep.subr.bf16.mxu0 %v358_v0 }
  0x47   :  { %258 = vmatpush3.bf16.msra.mxu0 %v257_v25 }
  0x4a   :  { %233 = vmatmul.mubr.f32.vlgmr.msra.gmra.mrb[0].mxu0 %v44_v26 }
 0x11d   :  { %v134_v28 = vpop.f32.mrb[0].mxu0 }
 0x11e   :  { %v135_v29 = vadd.f32 %v182_v27, %v134_v28  ;;  %v234_v30 = vpop.f32.mrb[1].mxu0 }
 0x120   :  { %138 = vst [vmem:[#allocation8] sm:$0xff] %v135_v29  ;;  %139 = vadd.xlane.f32.xlu0 %v135_v29 }
 0x121   :  { %325 = shalt.err (!%p322_p6)
}
 0x122   :  { %s326_s20 = scalar_lea.hbm %s449_s3, 128 }
 0x123   :  { %p327_p7 = scmp.ne.s32.totalorder %s449_s3, %s326_s20  ;;  %p330_p8 = scmp.lt.u32.totalorder %s326_s20, %s449_s3 }
 0x125   :  { %p332_p9 = pnand %p330_p8, %p327_p7 }
 0x127   :  { %335 = shalt.err (!%p332_p9)
}
 0x128   :  { %162 = dma.vmem_to_hbm [thread:$0]  %s160_s16, 128, %s449_s3, [#allocation4]  }
 0x129   :  { %s336_s30 = scalar_lea.hbm %s450_s4, 16 }
 0x12a   :  { %p337_p10 = scmp.ne.s32.totalorder %s450_s4, %s336_s30  ;;  %p340_p11 = scmp.lt.u32.totalorder %s336_s30, %s450_s4 }
 0x12c   :  { %p342_p12 = pnand %p340_p11, %p337_p10 }
 0x1ad   :  { %v140_v31 = vpop.xlane.xlu0 %139 }
 0x1ae   :  { %v141_v32 = vrot.slane %v140_v31, 4 }
 0x1b0   :  { %v142_v33 = vadd.f32 %v141_v32, %v140_v31 }
 0x1b2   :  { %v143_v34 = vrot.slane %v142_v33, 2 }
 0x1b4   :  { %v144_v35 = vadd.f32 %v143_v34, %v142_v33 }
 0x1b6   :  { %v145_v36 = vrot.slane %v144_v35, 1 }
 0x1b8   :  { %v146_v37 = vadd.f32 %v145_v36, %v144_v35 }
 0x1ba   :  { %259 = vpush %v146_v37 }
 0x1eb   :  { %s260_s26 = spop %259 }
 0x1ec   :  { %s150_s27 = smul.f32 0.125, %s260_s26 }
 0x1ee   :  { %152 = sst [smem:[#allocation9]] %s150_s27 }
 0x1ef   :  { %345 = shalt.err (!%p342_p12)
}
 0x1f0   :  { %s362_s8 = smov [#allocation9]  }
 0x1f1   :  { %170 = dma.smem_to_hbm %s362_s8, 16, %s450_s4, [#allocation5]  }
 0x1f2   :  { %350 = dma.done.wait [#allocation4], 128  }
 0x1f3   :  { %351 = vsyncadd [#allocation4], 4294967168 }
 0x1f4   :  { %352 = dma.done.wait [#allocation5], 16  }
 0x1f5   :  { %353 = vsyncadd [#allocation5], 4294967280 }
 0x1f6   :  { %177 = sfence }
 0x1f7   :  { %178 = vsyncpa [#allocation3], 1 }
 0x1f8   :  { %179 = vsyncpa [#allocation7], 1 }
 0x1f9   :  { %180 = vsyncpa [#allocation4], 1 }
 0x1fa   :  { %181 = vsyncpa [#allocation5], 1 }

</bundles_post_ra>
